<compile_context>
chip_gen: v5e
topology: v5e:2x2
jax: 0.10.0
libtpu: 0.0.40
codegen_flags: <defaults>
</compile_context>

<pallas_src>
import functools

import jax
import jax.numpy as jnp
from jax import lax
from jax.experimental import pallas as pl
from jax.experimental.pallas import tpu as pltpu


def _rotary_kernel(fp_ref, cos_ref, sin_ref, *, ts: int, dim: int):
    # fp_ref:  (2, 2*dim) f32 block-resident constants
    #            row 0: inv_freq tiled 4x across lanes (frequency per output lane)
    #            row 1: phase (0 for cos lanes, pi/2 for sin lanes)
    # cos_ref: (ts, dim) f32 output tile
    # sin_ref: (ts, dim) f32 output tile
    start = pl.program_id(0) * ts
    # Full-width int iota + one full-width convert (VPU); positions are exact
    # in f32 up to 2^24, fine for realistic caches.
    pos = (start + lax.broadcasted_iota(jnp.int32, (ts, 2 * dim), 0)).astype(jnp.float32)

    freq = fp_ref[0:1, :]     # (1, 2*dim)
    phase = fp_ref[1:2, :]    # (1, 2*dim)

    # Single full-lane-width EUP pass:
    #   lanes [0, dim)      -> cos(t * inv_freq)
    #   lanes [dim, 2*dim)  -> cos(t * inv_freq - pi/2) = sin(t * inv_freq)
    fused = jnp.cos(pos * freq - phase)                     # (ts, 2*dim)

    cos_ref[...] = fused[:, :dim]
    sin_ref[...] = fused[:, dim:]


def rotary_embedding_tables(dim: int, max_position_embeddings: int, base: float,
                            *, tile_rows: int = 4096):
    """Returns (cos_cached, sin_cached), each (max_position_embeddings, dim), f32."""
    assert dim % 2 == 0
    S = max_position_embeddings

    # Tiny deterministic "parameter" setup (same as module __init__), plain JAX glue.
    inv_freq = 1.0 / (base ** (jnp.arange(0, dim, 2, dtype=jnp.float32) / dim))
    freq_row = jnp.tile(inv_freq, 4)                                    # (2*dim,)
    phase_row = jnp.concatenate([jnp.zeros((dim,), jnp.float32),
                                 jnp.full((dim,), jnp.pi / 2, jnp.float32)])
    freq_phase = jnp.stack([freq_row, phase_row])                       # (2, 2*dim)

    # Tile the sequence axis.  Keep ts a multiple of 8 (or == S) and, for large
    # caches, keep at least 4 grid steps so v7x megacore sharding + output
    # double-buffering both stay active.
    ts = min(tile_rows, S)
    if S >= 4 * 256:
        ts = min(ts, max(256, ((S + 3) // 4 + 7) // 8 * 8))
    grid = (pl.cdiv(S, ts),)

    cos_cached, sin_cached = pl.pallas_call(
        functools.partial(_rotary_kernel, ts=ts, dim=dim),
        out_shape=(jax.ShapeDtypeStruct((S, dim), jnp.float32),
                   jax.ShapeDtypeStruct((S, dim), jnp.float32)),
        grid=grid,
        in_specs=[
            # Constants are block-resident: same (0, 0) block for every grid step.
            pl.BlockSpec((2, 2 * dim), lambda i: (0, 0)),
        ],
        out_specs=(pl.BlockSpec((ts, dim), lambda i: (i, 0)),
                   pl.BlockSpec((ts, dim), lambda i: (i, 0))),
        compiler_params=pltpu.CompilerParams(
            dimension_semantics=("parallel",),
        ),
        cost_estimate=pl.CostEstimate(
            flops=2 * S * 2 * dim,                 # mul + sub per element
            transcendentals=S * 2 * dim,           # one cos per output element
            bytes_accessed=2 * S * dim * 4 + 2 * 2 * dim * 4,
        ),
    )(freq_phase)
    return cos_cached, sin_cached


def rotary_embedding_reference(dim, max_position_embeddings, base):
    inv_freq = 1.0 / (base ** (jnp.arange(0, dim, 2, dtype=jnp.float32) / dim))
    t = jnp.arange(max_position_embeddings, dtype=jnp.float32)
    freqs = jnp.outer(t, inv_freq)
    emb = jnp.concatenate([freqs, freqs], axis=-1)
    return jnp.cos(emb), jnp.sin(emb)


if __name__ == "__main__":
    # Deterministic setup (PRNG key unused for values — the module's buffers are
    # fully determined by dim / max_position_embeddings / base).
    _ = jax.random.PRNGKey(0)

    dim = 64                       # rotary head dim
    max_position_embeddings = 128  # sequence length of the cache
    base = 10000.0

    # tile_rows=32 at this small size exercises a multi-step grid (grid=(4,));
    # at production sizes the default 4096-row tile / >=4-step heuristic is used.
    cos_cached, sin_cached = rotary_embedding_tables(
        dim, max_position_embeddings, base, tile_rows=32)
    cos_cached = jax.block_until_ready(cos_cached)
    sin_cached = jax.block_until_ready(sin_cached)

    cos_ref, sin_ref = rotary_embedding_reference(dim, max_position_embeddings, base)
    assert cos_cached.shape == (max_position_embeddings, dim)
    assert sin_cached.shape == (max_position_embeddings, dim)
    assert jnp.allclose(cos_cached, cos_ref, atol=1e-5, rtol=1e-5)
    assert jnp.allclose(sin_cached, sin_ref, atol=1e-5, rtol=1e-5)

    print("KERNEL_OK")
</pallas_src>

<mosaic_0001>
module attributes {stable_mosaic.version = 11 : i64} {
  func.func @_rotary_kernel(%arg0: i32, %arg1: memref<2x128xf32, #tpu.memory_space<vmem>>, %arg2: memref<32x64xf32, #tpu.memory_space<vmem>>, %arg3: memref<32x64xf32, #tpu.memory_space<vmem>>) attributes {dimension_semantics = [#tpu.dimension_semantics<parallel>], iteration_bounds = array<i64: 4>, scalar_prefetch = 0 : i64, scratch_operands = 0 : i64, tpu.core_type = #tpu.core_type<tc>, window_params = [{pipeline_mode = #tpu.pipeline_mode<synchronous>, transform_indices = @transform_0, window_bounds = array<i64: 2, 128>}, {transform_indices = @transform_1, window_bounds = array<i64: 32, 64>}, {transform_indices = @transform_2, window_bounds = array<i64: 32, 64>}]} {
    %c32_i32 = arith.constant 32 : i32
    %0 = arith.muli %arg0, %c32_i32 : i32
    %1 = tpu.iota {dimensions = array<i32: 0>} : vector<32x128xi32>
    %2 = vector.broadcast %0 : i32 to vector<32x128xi32>
    %3 = arith.addi %2, %1 : vector<32x128xi32>
    %4 = arith.sitofp %3 : vector<32x128xi32> to vector<32x128xf32>
    %c0 = arith.constant 0 : index
    %c0_0 = arith.constant 0 : index
    %5 = vector.load %arg1[%c0, %c0_0] : memref<2x128xf32, #tpu.memory_space<vmem>>, vector<1x128xf32>
    %c1 = arith.constant 1 : index
    %c0_1 = arith.constant 0 : index
    %6 = vector.load %arg1[%c1, %c0_1] : memref<2x128xf32, #tpu.memory_space<vmem>>, vector<1x128xf32>
    %7 = vector.broadcast %5 : vector<1x128xf32> to vector<32x128xf32>
    %8 = arith.mulf %4, %7 : vector<32x128xf32>
    %9 = vector.broadcast %6 : vector<1x128xf32> to vector<32x128xf32>
    %10 = arith.subf %8, %9 : vector<32x128xf32>
    %11 = math.cos %10 : vector<32x128xf32>
    %12 = vector.extract_strided_slice %11 {offsets = [0, 0], sizes = [32, 64], strides = [1, 1]} : vector<32x128xf32> to vector<32x64xf32>
    %c0_2 = arith.constant 0 : index
    %c0_3 = arith.constant 0 : index
    %13 = vector.load %arg2[%c0_2, %c0_3] : memref<32x64xf32, #tpu.memory_space<vmem>>, vector<32x64xf32>
    tpu.vector_store %arg2[%c0_2, %c0_3], %12 {strides = array<i32>} : memref<32x64xf32, #tpu.memory_space<vmem>>, vector<32x64xf32>,
    %14 = vector.extract_strided_slice %11 {offsets = [0, 64], sizes = [32, 64], strides = [1, 1]} : vector<32x128xf32> to vector<32x64xf32>
    %c0_4 = arith.constant 0 : index
    %c0_5 = arith.constant 0 : index
    %15 = vector.load %arg3[%c0_4, %c0_5] : memref<32x64xf32, #tpu.memory_space<vmem>>, vector<32x64xf32>
    tpu.vector_store %arg3[%c0_4, %c0_5], %14 {strides = array<i32>} : memref<32x64xf32, #tpu.memory_space<vmem>>, vector<32x64xf32>,
    return
  }
  func.func @transform_0(%arg0: i32) -> (i32, i32) {
    %c0_i32 = arith.constant 0 : i32
    %c0_i32_0 = arith.constant 0 : i32
    %c0_i32_1 = arith.constant 0 : i32
    return %c0_i32, %c0_i32_0 : i32, i32
  }
  func.func @transform_1(%arg0: i32) -> (i32, i32) {
    %c0_i32 = arith.constant 0 : i32
    %c0_i32_0 = arith.constant 0 : i32
    return %arg0, %c0_i32 : i32, i32
  }
  func.func @transform_2(%arg0: i32) -> (i32, i32) {
    %c0_i32 = arith.constant 0 : i32
    %c0_i32_0 = arith.constant 0 : i32
    return %arg0, %c0_i32 : i32, i32
  }
}

</mosaic_0001>

<bundles_post_ra>
// kernel: tpu_custom_call.1
= control target key start
LH: loop header
LB: loop body
LE: loop exit
PB: predicated region body
PF: predicated region fallthrough
CT: control target
= control target key end

     0   :  { %8 = vsyncpa [#allocation3], 0  ;;  %s1032_s9 = smov 0   ;;  %s1501_s0 = inlined_call_operand.hbm [shape: f32[2,128], index: 0, kind: input, shape index: {}]   ;;  %s1502_s1 = inlined_call_operand.vmem [shape: f32[128,64], index: 1, kind: output, shape index: {0}]   ;;  %s1503_s2 = inlined_call_operand.vmem [shape: f32[128,64], index: 2, kind: output, shape index: {1}]  }
   0x1 LB: > { %s1038_s10 = sadd.s32 4294967295, %s1006_s9   ;;  %p914_p0 = scmp.ge.s32.totalorder %s1006_s9, 1  ;;  %s1006_s9 = sphi %s1032_s9, %s14_s9  }
   0x2   : > { %p92_p1 = scmp.lt.s32.totalorder %s1006_s9, 5  ;;  %s104_s13 = sshll.u32 %s1501_s0, 4  ;;  %s105_s13 = int_to_ptr.hbm [resolvable:$true] %s104_s13 }
   0x3   : > { %p945_p3 = scmp.eq.s32.totalorder %s1038_s10, 0  ;;  %s1008_s14 = smov [#allocation2]  }
   0x4   : > { %p93_p2 = pnand %p914_p0, %p92_p1  ;;  %s106_s15 = sshll.u32 %s1008_s14, 4  ;;  %s107_s15 = int_to_ptr.vmem [resolvable:$true] %s106_s15 }
   0x6   : > { %p941_p4 = pneg %p93_p2  ;;  %119 = sbr.rel (%p93_p2) target bundleno = 336 (0x150), region = 24 }
   0x8   : > { %p942_p5 = pnand %p945_p3, %p941_p4 }
   0xa   : > { %944 = dma.hbm_to_vmem [thread:$0]  (!%p942_p5), %s105_s13, 32, %s107_s15, [#allocation3]  }
   0xb   : > { %1001 = dma.done.wait (%p945_p3), [#allocation3], 32  }
   0xc   : > { %1003 = vsyncadd (%p945_p3), [#allocation3], 4294967264  ;;  %s922_s16 = sshll.u32 %s1038_s10, 5  ;;  %v155_v0 = vlaneseq  ;;  %v1057_v9 = vld [vmem:[#allocation2] ss:$0 sm:$0xff]  ;;  %s1016_s17 = smov 64  }
   0xd   : > { %v1047_v1 = vstv %s922_s16  ;;  %v1059_v11 = vld [vmem:[#allocation2 + $0x1] ss:$0 sm:$0xff]  ;;  %v1009_v48 = vmov 683565275   ;;  %v1010_v50 = vmov 2475754826  }
   0xe   : > { %v1049_v2 = vshrl.u32 %v155_v0, 7  ;;  %v1011_v52 = vmov 2131351028   ;;  %v1012_v54 = vmov 2102212464   ;;  %s918_s18 = sshll.u32 %s1038_s10, 2 }
   0xf   : > { %v1013_v56 = vmov 920167782   ;;  %p143_p6 = scmp.lt.s32.totalorder %s918_s18, 15 }
  0x10   : > { %v158_v3 = vadd.s32 16, %v1049_v2  ;;  %v161_v4 = vadd.s32 %v1047_v1, %v1049_v2  ;;  %v159_v5 = vadd.s32 24, %v1049_v2 }
  0x11   : > { %s1513_s18 = smov (!%p143_p6, %s918_s18), 15 }
  0x12   : > { %v163_v6 = vadd.s32 %v1047_v1, %v158_v3  ;;  %v165_v7 = vcvt.s32.f32 %v161_v4  ;;  %v164_v8 = vadd.s32 %v1047_v1, %v159_v5  ;;  %v1014_v4 = vmov 1326507024   ;;  %s919_s19 = sshll.u32 %s1513_s18, 3 }
  0x13   : > { %s146_s22 = scalar_lea.vmem %s1502_s1, %s919_s19  ;;  %s152_s25 = scalar_lea.vmem %s1503_s2, %s919_s19 }
  0x14   : > { %v167_v10 = vcvt.s32.f32 %v163_v6  ;;  %v168_v12 = vcvt.s32.f32 %v164_v8  ;;  %v172_v13 = vmul.f32 %v1057_v9, %v165_v7 }
  0x16   : > { %v174_v14 = vmul.f32 %v1057_v9, %v167_v10  ;;  %v175_v15 = vmul.f32 %v1057_v9, %v168_v12  ;;  %v1065_v16 = vsub.f32 %v172_v13, %v1059_v11 }
  0x18   : > { %v1068_v17 = vsub.f32 %v174_v14, %v1059_v11  ;;  %v1071_v18 = vsub.f32 %v175_v15, %v1059_v11  ;;  %v181_v19 = vand.u32 2147483647, %v1065_v16  ;;  %v184_v20 = vand.u32 2139095040, %v1065_v16 }
  0x1a   : > { %v489_v21 = vand.u32 2147483647, %v1068_v17  ;;  %v492_v22 = vand.u32 2139095040, %v1068_v17  ;;  %v185_v23 = vshrl.u32 %v184_v20, 23  ;;  %v188_v24 = vand.u32 8388607, %v181_v19 }
  0x1b   : > { %v646_v27 = vand.u32 2139095040, %v1071_v18 }
  0x1c   : > { %v493_v25 = vshrl.u32 %v492_v22, 23  ;;  %v496_v26 = vand.u32 8388607, %v489_v21  ;;  %v923_v28 = vadd.s32 4294967169, %v185_v23  ;;  %v189_v29 = vor.u32 8388608, %v188_v24 }
  0x1d   : > { %v647_v35 = vshrl.u32 %v646_v27, 23 }
  0x1e   : > { %v929_v30 = vadd.s32 4294967169, %v493_v25  ;;  %v497_v31 = vor.u32 8388608, %v496_v26  ;;  %v191_v32 = vadd.s32 1, %v923_v28  ;;  %v1082_v34 = vshll.u32 %v189_v29, 8 }
  0x1f   : > { %v1091_v42 = vadd.s32 4294967169, %v647_v35 }
  0x20   : > { %v499_v33 = vadd.s32 1, %v929_v30  ;;  %v1084_v36 = vshll.u32 %v497_v31, 8  ;;  %vm192_vm0 = vcmp.gt.s32.totalorder %v191_v32, 0  ;;  %v1089_v41 = vand.u32 65535, %v1082_v34 }
  0x21   : > { %v193_v37 = vsel %vm192_vm0, %v191_v32, 0  ;;  %v1100_v46 = vshrl.u32 %v1082_v34, 16 }
  0x22   : > { %vm500_vm1 = vcmp.gt.s32.totalorder %v499_v33, 0  ;;  %v1086_v39 = vand.u32 31, %v193_v37  ;;  %v538_v44 = vand.u32 65535, %v1084_v36  ;;  %v1097_v45 = vshrl.u32 %v1084_v36, 16 }
  0x23   : > { %v501_v38 = vsel %vm500_vm1, %v499_v33, 0  ;;  %v1136_v29 = vshrl.u32 %v193_v37, 5 }
  0x24   : > { %v503_v40 = vand.u32 31, %v501_v38  ;;  %v1093_v43 = vshrl.u32 %v501_v38, 5  ;;  %v1108_v58 = vsub.s32 32, %v1086_v39  ;;  %v198_v59 = vshll.u32 %v1009_v48, %v1086_v39 }
  0x25   : > { %v201_v63 = vshll.u32 %v1010_v50, %v1086_v39  ;;  %v204_v13 = vshll.u32 %v1011_v52, %v1086_v39  ;;  %vm213_vm9 = vcmp.lt.s32.totalorder %v1136_v29, 1  ;;  %vm215_vm11 = vcmp.lt.s32.totalorder %v1136_v29, 3 }
  0x26   : > { %v504_v47 = vsub.s32 32, %v503_v40  ;;  %v506_v49 = vshll.u32 %v1009_v48, %v503_v40  ;;  %v509_v51 = vshll.u32 %v1010_v50, %v503_v40  ;;  %v512_v53 = vshll.u32 %v1011_v52, %v503_v40 }
  0x27   : > { %v515_v55 = vshll.u32 %v1012_v54, %v503_v40  ;;  %v518_v57 = vshll.u32 %v1013_v56, %v503_v40  ;;  %vm521_vm2 = vcmp.lt.s32.totalorder %v1093_v43, 1  ;;  %vm524_vm3 = vcmp.lt.s32.totalorder %v1093_v43, 4 }
  0x28   : > { %v507_v60 = vshrl.u32 %v1010_v50, %v504_v47  ;;  %v510_v61 = vshrl.u32 %v1011_v52, %v504_v47  ;;  %v513_v62 = vshrl.u32 %v1012_v54, %v504_v47  ;;  %v505_v0 = vshrl.u32 %v1009_v48, %v504_v47 }
  0x29   : > { %v516_v3 = vshrl.u32 %v1013_v56, %v504_v47  ;;  %v519_v5 = vshrl.u32 %v1014_v4, %v504_v47  ;;  %vm523_vm4 = vcmp.lt.s32.totalorder %v1093_v43, 3  ;;  %vm522_vm5 = vcmp.lt.s32.totalorder %v1093_v43, 2 }
  0x2a   : > { %v508_v6 = vor.u32 %v507_v60, %v506_v49  ;;  %v511_v7 = vor.u32 %v510_v61, %v509_v51  ;;  %v514_v8 = vor.u32 %v513_v62, %v512_v53  ;;  %v199_v24 = vshrl.u32 %v1010_v50, %v1108_v58 }
  0x2b   : > { %v517_v10 = vor.u32 %v516_v3, %v515_v55  ;;  %v520_v12 = vor.u32 %v519_v5, %v518_v57  ;;  %v202_v25 = vshrl.u32 %v1011_v52, %v1108_v58  ;;  %v205_v33 = vshrl.u32 %v1012_v54, %v1108_v58 }
  0x2c   : > { %v526_v14 = vsel %vm524_vm3, %v514_v8, 2102212464  ;;  %v529_v15 = vsel %vm521_vm2, %v508_v6, %v511_v7  ;;  %v533_v20 = vsel %vm521_vm2, %v511_v7, %v514_v8  ;;  %v525_v26 = vsel %vm521_vm2, %v505_v0, %v508_v6 }
  0x2d   : > { %v530_v22 = vsel %vm524_vm3, %v517_v10, 920167782  ;;  %v534_v23 = vsel %vm524_vm3, %v520_v12, 1326507024  ;;  %v527_v30 = vsel %vm523_vm4, %v511_v7, %v526_v14  ;;  %v1144_v49 = vor.u32 %v199_v24, %v198_v59 }
  0x2e   : > { %v531_v27 = vsel %vm523_vm4, %v514_v8, %v530_v22  ;;  %v535_v28 = vsel %vm523_vm4, %v517_v10, %v534_v23  ;;  %v1146_v51 = vor.u32 %v202_v25, %v201_v63  ;;  %v1148_v37 = vor.u32 %v205_v33, %v204_v13 }
  0x2f   : > { %v532_v31 = vsel %vm522_vm5, %v529_v15, %v531_v27  ;;  %v536_v32 = vsel %vm522_vm5, %v533_v20, %v535_v28  ;;  %v207_v53 = vshll.u32 %v1012_v54, %v1086_v39  ;;  %v208_v61 = vshrl.u32 %v1013_v56, %v1108_v58 }
  0x30   : > { %v540_v35 = vand.u32 65535, %v536_v32  ;;  %v541_v38 = vshrl.u32 %v536_v32, 16  ;;  %v562_v40 = vand.u32 65535, %v532_v31  ;;  %v563_v47 = vshrl.u32 %v532_v31, 16 }
  0x31   : > { %v210_v59 = vshll.u32 %v1013_v56, %v1086_v39  ;;  %v1015_v20 = vmov 0   ;;  %v209_v23 = vor.u32 %v208_v61, %v207_v53  ;;  %vm214_vm12 = vcmp.lt.s32.totalorder %v1136_v29, 2 }
  0x32   : > { %v542_v55 = vmul.u32 %v540_v35, %v538_v44  ;;  %v543_v57 = vmul.u32 %v541_v38, %v538_v44  ;;  %v544_v60 = vmul.u32 %v540_v35, %v1097_v45  ;;  %v564_v62 = vmul.u32 %v562_v40, %v538_v44 }
  0x33   : > { %v565_v0 = vmul.u32 %v563_v47, %v538_v44  ;;  %v566_v3 = vmul.u32 %v562_v40, %v1097_v45  ;;  %v545_v63 = vmul.u32 %v541_v38, %v1097_v45  ;;  %v567_v7 = vmul.u32 %v563_v47, %v1097_v45 }
  0x34   : > { %v546_v5 = vshll.u32 %v543_v57, 16  ;;  %v548_v6 = vshll.u32 %v544_v60, 16  ;;  %v547_v8 = vshrl.u32 %v543_v57, 16  ;;  %v549_v10 = vshrl.u32 %v544_v60, 16 }
  0x35   : > { %v568_v12 = vshll.u32 %v565_v0, 16  ;;  %v570_v13 = vshll.u32 %v566_v3, 16  ;;  %v569_v15 = vshrl.u32 %v565_v0, 16  ;;  %v211_v44 = vshrl.u32 %v1014_v4, %v1108_v58 }
  0x36   : > { %vm550_vm6 = vc.u32 %v542_v55, %v546_v5  ;;  %v552_v14 = vadd.s32 %v546_v5, %v542_v55  ;;  %v571_v32 = vshrl.u32 %v566_v3, 16  ;;  %vm216_vm13 = vcmp.lt.s32.totalorder %v1136_v29, 4 }
  0x37   : > { %v551_v22 = vsel %vm550_vm6, 1, %v1015_v20  ;;  %vm572_vm7 = vc.u32 %v564_v62, %v568_v12  ;;  %v574_v39 = vadd.s32 %v568_v12, %v564_v62  ;;  %v212_v28 = vor.u32 %v211_v44, %v210_v59 }
  0x38   : > { %v553_v24 = vadd.s32 %v551_v22, %v545_v63  ;;  %vm554_vm8 = vc.u32 %v552_v14, %v548_v6  ;;  %v573_v45 = vsel %vm572_vm7, 1, %v1015_v20  ;;  %v221_v38 = vsel %vm213_vm9, %v1144_v49, %v1146_v51 }
  0x39   : > { %v555_v25 = vsel %vm554_vm8, 1, %v1015_v20  ;;  %v575_v27 = vadd.s32 %v573_v45, %v567_v7  ;;  %vm576_vm10 = vc.u32 %v574_v39, %v570_v13  ;;  %v1174_v47 = vadd.s32 %v574_v39, %v570_v13 }
  0x3a   : > { %v557_v31 = vadd.s32 %v555_v25, %v553_v24  ;;  %v577_v33 = vsel %vm576_vm10, 1, %v1015_v20  ;;  %v222_v53 = vsel %vm216_vm13, %v209_v23, 920167782  ;;  %v225_v55 = vsel %vm213_vm9, %v1146_v51, %v1148_v37 }
  0x3b   : > { %v579_v35 = vadd.s32 %v577_v33, %v575_v27  ;;  %v528_v57 = vsel %vm522_vm5, %v525_v26, %v527_v30  ;;  %v223_v61 = vsel %vm215_vm11, %v1148_v37, %v222_v53  ;;  %v226_v62 = vsel %vm216_vm13, %v212_v28, 1326507024 }
  0x3c   : > { %v558_v40 = vadd.s32 %v557_v31, %v547_v8  ;;  %v224_v3 = vsel %vm214_vm12, %v221_v38, %v223_v61  ;;  %v227_v59 = vsel %vm215_vm11, %v209_v23, %v226_v62  ;;  %v653_v63 = vadd.s32 1, %v1091_v42 }
  0x3d   : > { %v580_v60 = vadd.s32 %v579_v35, %v569_v15  ;;  %v228_v26 = vsel %vm214_vm12, %v225_v55, %v227_v59  ;;  %v254_v30 = vand.u32 65535, %v224_v3  ;;  %v255_v5 = vshrl.u32 %v224_v3, 16 }
  0x3e   : > { %v1189_v0 = vadd.s32 %v558_v40, %v549_v10  ;;  %v582_v6 = vmul.u32 %v1084_v36, %v528_v57  ;;  %v232_v7 = vand.u32 65535, %v228_v26  ;;  %v233_v8 = vshrl.u32 %v228_v26, 16 }
  0x3f   : > { %v581_v43 = vadd.s32 %v580_v60, %v571_v32  ;;  %v197_v12 = vshrl.u32 %v1009_v48, %v1108_v58  ;;  %v257_v13 = vmul.u32 %v255_v5, %v1089_v41  ;;  %v258_v42 = vmul.u32 %v254_v30, %v1100_v46 }
  0x40   : > { %vm584_vm14 = vc.u32 %v1189_v0, %v1174_v47  ;;  %v234_v14 = vmul.u32 %v232_v7, %v1089_v41  ;;  %v235_v15 = vmul.u32 %v233_v8, %v1089_v41  ;;  %v236_v44 = vmul.u32 %v232_v7, %v1100_v46 }
  0x41   : > { %v585_v10 = vadd.s32 1, %v581_v43  ;;  %v218_v22 = vsel %vm216_vm13, %v1148_v37, 2102212464  ;;  %v256_v39 = vmul.u32 %v254_v30, %v1089_v41  ;;  %v260_v23 = vshll.u32 %v257_v13, 16 }
  0x42   : > { %v237_v58 = vmul.u32 %v233_v8, %v1100_v46  ;;  %v238_v45 = vshll.u32 %v235_v15, 16  ;;  %vm654_vm15 = vcmp.gt.s32.totalorder %v653_v63, 0  ;;  %v217_v25 = vsel %vm213_vm9, %v197_v12, %v1144_v49 }
  0x43   : > { %v586_v36 = vsel %vm584_vm14, %v585_v10, %v581_v43  ;;  %v240_v27 = vshll.u32 %v236_v44, 16  ;;  %v259_v28 = vmul.u32 %v255_v5, %v1100_v46  ;;  %v262_v31 = vshll.u32 %v258_v42, 16 }
  0x44   : > { %v587_v24 = vadd.s32 %v586_v36, %v582_v6  ;;  %v219_v37 = vsel %vm215_vm11, %v1146_v51, %v218_v22  ;;  %vm242_vm0 = vc.u32 %v234_v14, %v238_v45  ;;  %v244_v41 = vadd.s32 %v238_v45, %v234_v14 }
  0x45   : > { %v239_v33 = vshrl.u32 %v235_v15, 16  ;;  %v243_v35 = vsel %vm242_vm0, 1, %v1015_v20  ;;  %vm264_vm1 = vc.u32 %v256_v39, %v260_v23  ;;  %v266_v38 = vadd.s32 %v260_v23, %v256_v39 }
  0x46   : > { %v588_v32 = vadd.s32 536870912, %v587_v24  ;;  %v245_v53 = vadd.s32 %v243_v35, %v237_v58  ;;  %vm246_vm2 = vc.u32 %v244_v41, %v240_v27  ;;  %v265_v49 = vsel %vm264_vm1, 1, %v1015_v20 }
  0x47   : > { %v247_v46 = vsel %vm246_vm2, 1, %v1015_v20  ;;  %v261_v55 = vshrl.u32 %v257_v13, 16  ;;  %v267_v57 = vadd.s32 %v265_v49, %v259_v28  ;;  %vm268_vm3 = vc.u32 %v266_v38, %v262_v31 }
  0x48   : > { %v1221_v40 = vshrl.u32 %v588_v32, 30  ;;  %v241_v60 = vshrl.u32 %v236_v44, 16  ;;  %v249_v61 = vadd.s32 %v247_v46, %v245_v53  ;;  %v269_v62 = vsel %vm268_vm3, 1, %v1015_v20 }
  0x49   : > { %v263_v3 = vshrl.u32 %v258_v42, 16  ;;  %v271_v59 = vadd.s32 %v269_v62, %v267_v57  ;;  %v655_v43 = vsel %vm654_vm15, %v653_v63, 0  ;;  %v1228_v5 = vadd.s32 %v266_v38, %v262_v31 }
  0x4a   : > { %v590_v51 = vshll.u32 %v1221_v40, 30  ;;  %v250_v30 = vadd.s32 %v249_v61, %v239_v33  ;;  %v220_v6 = vsel %vm214_vm12, %v217_v25, %v219_v37  ;;  %v657_v8 = vand.u32 31, %v655_v43 }
  0x4b   : > { %v272_v7 = vadd.s32 %v271_v59, %v261_v55  ;;  %v643_v13 = vand.u32 2147483647, %v1071_v18  ;;  %v274_v63 = vmul.u32 %v1082_v34, %v220_v6  ;;  %v583_v31 = vadd.s32 %v1174_v47, %v1189_v0 }
  0x4c   : > { %v591_v26 = vsub.s32 %v587_v24, %v590_v51  ;;  %v1232_v12 = vadd.s32 %v250_v30, %v241_v60  ;;  %v658_v42 = vsub.s32 32, %v657_v8  ;;  %v660_v44 = vshll.u32 %v1009_v48, %v657_v8 }
  0x4d   : > { %v273_v14 = vadd.s32 %v272_v7, %v263_v3  ;;  %v663_v39 = vshll.u32 %v1010_v50, %v657_v8  ;;  %v650_v23 = vand.u32 8388607, %v643_v13  ;;  %v669_v58 = vshll.u32 %v1012_v54, %v657_v8 }
  0x4e   : > { %vm592_vm4 = vcmp.lt.s32.totalorder %v591_v26, 0  ;;  %v593_v10 = vsub.s32 0, %v591_v26  ;;  %vm276_vm5 = vc.u32 %v1232_v12, %v1228_v5  ;;  %v661_v22 = vshrl.u32 %v1010_v50, %v658_v42 }
  0x4f   : > { %v277_v36 = vadd.s32 1, %v273_v14  ;;  %v664_v24 = vshrl.u32 %v1011_v52, %v658_v42  ;;  %v670_v34 = vshrl.u32 %v1013_v56, %v658_v42  ;;  %v666_v27 = vshll.u32 %v1011_v52, %v657_v8 }
  0x50   : > { %v594_v15 = vsel %vm592_vm4, %v593_v10, %v591_v26  ;;  %v667_v28 = vshrl.u32 %v1012_v54, %v658_v42  ;;  %v613_v32 = vsub.s32 4, %v1221_v40  ;;  %v1251_v41 = vshrl.u32 %v655_v43, 5 }
  0x51   : > { %v595_v29 = vclz %v594_v15  ;;  %v278_v25 = vsel %vm276_vm5, %v277_v36, %v273_v14  ;;  %v662_v33 = vor.u32 %v661_v22, %v660_v44  ;;  %v1253_v35 = vor.u32 %v664_v24, %v663_v39 }
  0x52   : > { %v279_v37 = vadd.s32 %v278_v25, %v274_v63  ;;  %v672_v38 = vshll.u32 %v1013_v56, %v657_v8  ;;  %v671_v46 = vor.u32 %v670_v34, %v669_v58  ;;  %v673_v55 = vshrl.u32 %v1014_v4, %v658_v42 }
  0x53   : > { %v930_v45 = vadd.s32 4294967294, %v595_v29  ;;  %v668_v47 = vor.u32 %v667_v28, %v666_v27  ;;  %v651_v61 = vor.u32 8388608, %v650_v23  ;;  %vm675_vm7 = vcmp.lt.s32.totalorder %v1251_v41, 1 }
  0x54   : > { %v280_v49 = vadd.s32 536870912, %v279_v37  ;;  %vm677_vm8 = vcmp.lt.s32.totalorder %v1251_v41, 3  ;;  %vm491_vm9 = vcmp.lt.s32.totalorder %v1068_v17, 0  ;;  %vm678_vm10 = vcmp.lt.s32.totalorder %v1251_v41, 4 }
  0x55   : > { %vm931_vm6 = vcmp.lt.s32.totalorder %v930_v45, 0  ;;  %v674_v43 = vor.u32 %v673_v55, %v672_v38  ;;  %vm676_vm11 = vcmp.lt.s32.totalorder %v1251_v41, 2  ;;  %v683_v7 = vsel %vm675_vm7, %v662_v33, %v1253_v35 }
  0x56   : > { %v598_v53 = vsel %vm931_vm6, 0, %v930_v45  ;;  %v1257_v0 = vshrl.u32 %v280_v49, 30  ;;  %v614_v10 = vsel %vm491_vm9, %v613_v32, %v1221_v40  ;;  %v1275_v15 = vshll.u32 %v651_v61, 8 }
  0x57   : > { %v599_v57 = vsub.s32 32, %v598_v53  ;;  %v600_v51 = vshll.u32 %v591_v26, %v598_v53  ;;  %v603_v60 = vsub.s32 4294967266, %v598_v53  ;;  %v684_v26 = vsel %vm678_vm10, %v671_v46, 920167782 }
  0x58   : > { %v282_v59 = vshll.u32 %v1257_v0, 30  ;;  %v685_v8 = vsel %vm677_vm8, %v668_v47, %v684_v26  ;;  %vm1279_vm12 = vcmp.le.f32.partialorder %v489_v21, 0.7853982  ;;  %v687_v40 = vsel %vm675_vm7, %v1253_v35, %v668_v47 }
  0x59   : > { %v601_v62 = vshrl.u32 %v583_v31, %v599_v57  ;;  %v604_v3 = vadd.s32 127, %v603_v60  ;;  %v686_v22 = vsel %vm676_vm11, %v683_v7, %v685_v8  ;;  %v616_v23 = vsel %vm1279_vm12, 0, %v614_v10 }
  0x5a   : > { %v283_v14 = vsub.s32 %v279_v37, %v282_v59  ;;  %v659_v21 = vshrl.u32 %v1009_v48, %v658_v42  ;;  %v688_v24 = vsel %vm678_vm10, %v674_v43, 1326507024  ;;  %v692_v45 = vand.u32 65535, %v1275_v15 }
  0x5b   : > { %v602_v30 = vor.u32 %v601_v62, %v600_v51  ;;  %v605_v6 = vshll.u32 %v604_v3, 23  ;;  %v689_v34 = vsel %vm677_vm8, %v671_v46, %v688_v24  ;;  %v693_v25 = vshrl.u32 %v1275_v15, 16 }
  0x5c   : > { %vm284_vm13 = vcmp.lt.s32.totalorder %v283_v14, 0  ;;  %v285_v36 = vsub.s32 0, %v283_v14  ;;  %v690_v31 = vsel %vm676_vm11, %v687_v40, %v689_v34  ;;  %v717_v32 = vshrl.u32 %v686_v22, 16 }
  0x5d   : > { %v606_v44 = vor.u32 4788187, %v605_v6  ;;  %v609_v29 = vcvt.s32.f32 %v602_v30  ;;  %v680_v42 = vsel %vm678_vm10, %v668_v47, 2102212464  ;;  %v694_v37 = vand.u32 65535, %v690_v31 }
  0x5e   : > { %v286_v58 = vsel %vm284_vm13, %v285_v36, %v283_v14  ;;  %v695_v38 = vshrl.u32 %v690_v31, 16  ;;  %v157_v53 = vadd.s32 8, %v1049_v2  ;;  %v1302_v55 = vand.u32 3, %v616_v23 }
  0x5f   : > { %v607_v39 = vand.u32 2147483647, %v606_v44  ;;  %v287_v28 = vclz %v286_v58  ;;  %v275_v46 = vadd.s32 %v1228_v5, %v1232_v12  ;;  %v679_v51 = vsel %vm675_vm7, %v659_v21, %v662_v33 }
  0x60   : > { %v697_v60 = vmul.u32 %v695_v38, %v692_v45  ;;  %v1308_v61 = vmul.u32 %v694_v37, %v693_v25  ;;  %v716_v62 = vand.u32 65535, %v686_v22  ;;  %v681_v2 = vsel %vm677_vm8, %v1253_v35, %v680_v42 }
  0x61   : > { %v610_v27 = vmul.f32 %v609_v29, %v607_v39  ;;  %v924_v57 = vadd.s32 4294967294, %v287_v28  ;;  %v1315_v3 = vmul.u32 %v717_v32, %v692_v45  ;;  %v696_v33 = vmul.u32 %v694_v37, %v692_v45 }
  0x62   : > { %v700_v59 = vshll.u32 %v697_v60, 16  ;;  %v1326_v7 = vsel %vm676_vm11, %v679_v51, %v681_v2  ;;  %v702_v35 = vshll.u32 %v1308_v61, 16  ;;  %v718_v8 = vmul.u32 %v716_v62, %v692_v45 }
  0x63   : > { %v611_v49 = vxor.u32 2147483648, %v610_v27  ;;  %vm925_vm14 = vcmp.lt.s32.totalorder %v924_v57, 0  ;;  %v1329_v10 = vmul.u32 %v716_v62, %v693_v25  ;;  %vm183_vm15 = vcmp.lt.s32.totalorder %v1065_v16, 0 }
  0x64   : > { %v290_v12 = vsel %vm925_vm14, 0, %v924_v57  ;;  %v699_v22 = vmul.u32 %v695_v38, %v693_v25  ;;  %vm704_vm0 = vc.u32 %v696_v33, %v700_v59  ;;  %v706_v40 = vadd.s32 %v700_v59, %v696_v33 }
  0x65   : > { %v612_v47 = vsel %vm491_vm9, %v611_v49, %v610_v27  ;;  %v291_v26 = vsub.s32 32, %v290_v12  ;;  %v292_v30 = vshll.u32 %v283_v14, %v290_v12  ;;  %v295_v6 = vsub.s32 4294967266, %v290_v12 }
  0x66   : > { %v1320_v5 = vsel %vm1279_vm12, %v1068_v17, %v612_v47  ;;  %v722_v14 = vshll.u32 %v1315_v3, 16  ;;  %vm1335_vm1 = vcmp.le.f32.partialorder %v181_v19, 0.7853982  ;;  %vm638_vm2 = vcmp.eq.s32.totalorder %v1302_v55, 2 }
  0x67   : > { %v617_v43 = vmul.f32 %v1320_v5, %v1320_v5  ;;  %v293_v29 = vshrl.u32 %v275_v46, %v291_v26  ;;  %v296_v36 = vadd.s32 127, %v295_v6  ;;  %v701_v58 = vshrl.u32 %v697_v60, 16 }
  0x68   : > { %v705_v34 = vsel %vm704_vm0, 1, %v1015_v20  ;;  %vm708_vm3 = vc.u32 %v706_v40, %v702_v35  ;;  %v721_v45 = vmul.u32 %v717_v32, %v693_v25  ;;  %v724_v19 = vshll.u32 %v1329_v10, 16 }
  0x69   : > { %v618_v63 = vmul.f32 -0.001358992, %v617_v43  ;;  %v625_v44 = vmul.f32 -0.00019511016, %v617_v43  ;;  %v294_v21 = vor.u32 %v293_v29, %v292_v30  ;;  %v297_v24 = vshll.u32 %v296_v36, 23 }
  0x6a   : > { %v707_v37 = vadd.s32 %v705_v34, %v699_v22  ;;  %v709_v38 = vsel %vm708_vm3, 1, %v1015_v20  ;;  %vm726_vm4 = vc.u32 %v718_v8, %v722_v14  ;;  %vm634_vm5 = vcmp.lt.s32.totalorder %v1302_v55, 2 }
  0x6b   : > { %v619_v39 = vadd.f32 0.041655596, %v618_v63  ;;  %v626_v41 = vadd.f32 0.008332121, %v625_v44  ;;  %v298_v31 = vor.u32 4788187, %v297_v24  ;;  %v301_v42 = vcvt.s32.f32 %v294_v21 }
  0x6c   : > { %v728_v51 = vadd.s32 %v722_v14, %v718_v8  ;;  %v703_v60 = vshrl.u32 %v1308_v61, 16  ;;  %v711_v62 = vadd.s32 %v709_v38, %v707_v37  ;;  %v727_v25 = vsel %vm726_vm4, 1, %v1015_v20 }
  0x6d   : > { %v620_v27 = vmul.f32 %v619_v39, %v617_v43  ;;  %v627_v28 = vmul.f32 %v626_v41, %v617_v43  ;;  %v299_v57 = vand.u32 2147483647, %v298_v31  ;;  %v162_v32 = vadd.s32 %v1047_v1, %v157_v53 }
  0x6e   : > { %v729_v33 = vadd.s32 %v727_v25, %v721_v45  ;;  %v712_v59 = vadd.s32 %v711_v62, %v701_v58  ;;  %v723_v26 = vshrl.u32 %v1315_v3, 16  ;;  %vm730_vm6 = vc.u32 %v728_v51, %v724_v19 }
  0x6f   : > { %v621_v49 = vadd.f32 -0.4999988, %v620_v27  ;;  %v628_v46 = vadd.f32 -0.16666654, %v627_v28  ;;  %v302_v12 = vmul.f32 %v301_v42, %v299_v57  ;;  %v166_v30 = vcvt.s32.f32 %v162_v32 }
  0x70   : > { %v731_v8 = vsel %vm730_vm6, 1, %v1015_v20  ;;  %v725_v61 = vshrl.u32 %v1329_v10, 16  ;;  %v1350_v44 = vadd.s32 %v728_v51, %v724_v19  ;;  %v1356_v36 = vadd.s32 %v712_v59, %v703_v60 }
  0x71   : > { %v622_v47 = vmul.f32 %v621_v49, %v617_v43  ;;  %v629_v2 = vmul.f32 %v628_v46, %v617_v43  ;;  %v303_v63 = vxor.u32 2147483648, %v302_v12  ;;  %v733_v29 = vadd.s32 %v731_v8, %v729_v33 }
  0x72   : > { %v173_v1 = vmul.f32 %v1057_v9, %v166_v30  ;;  %vm635_vm7 = vcmp.eq.s32.totalorder %v1302_v55, 0  ;;  %v305_v22 = vsub.s32 4, %v1257_v0  ;;  %vm632_vm8 = vweird.f32 %v1068_v17 }
  0x73   : > { %v623_v6 = vadd.f32 1.0, %v622_v47  ;;  %v630_v35 = vadd.f32 1.0, %v629_v2  ;;  %v304_v3 = vsel %vm183_vm15, %v303_v63, %v302_v12  ;;  %v734_v40 = vadd.s32 %v733_v29, %v723_v26 }
  0x74   : > { %v307_v10 = vsel %vm1335_vm1, %v1065_v16, %v304_v3  ;;  %v1366_v39 = vsub.f32 %v173_v1, %v1059_v11  ;;  %v736_v21 = vmul.u32 %v1275_v15, %v1326_v7  ;;  %vm738_vm9 = vc.u32 %v1356_v36, %v1350_v44 }
  0x75   : > { %v631_v53 = vmul.f32 %v630_v35, %v1320_v5  ;;  %v639_v43 = vxor.u32 2147483648, %v623_v6  ;;  %v309_v5 = vmul.f32 %v307_v10, %v307_v10  ;;  %v735_v41 = vadd.s32 %v734_v40, %v725_v61 }
  0x76   : > { %v306_v11 = vsel %vm183_vm15, %v305_v22, %v1257_v0  ;;  %v338_v17 = vand.u32 2139095040, %v1366_v39  ;;  %v335_v0 = vand.u32 2147483647, %v1366_v39  ;;  %vm324_vm12 = vweird.f32 %v1065_v16 }
  0x77   : > { %v636_v14 = vxor.u32 2147483648, %v631_v53  ;;  %v640_v9 = vsel %vm638_vm2, %v639_v43, %v631_v53  ;;  %v310_v58 = vmul.f32 -0.001358992, %v309_v5  ;;  %v317_v34 = vmul.f32 -0.00019511016, %v309_v5 }
  0x78   : > { %v739_v27 = vadd.s32 1, %v735_v41  ;;  %v339_v42 = vshrl.u32 %v338_v17, 23  ;;  %v308_v55 = vsel %vm1335_vm1, 0, %v306_v11  ;;  %v342_v2 = vand.u32 8388607, %v335_v0 }
  0x79   : > { %v637_v24 = vsel %vm635_vm7, %v623_v6, %v636_v14  ;;  %v311_v31 = vadd.f32 0.041655596, %v310_v58  ;;  %v318_v15 = vadd.f32 0.008332121, %v317_v34  ;;  %v325_v60 = vand.u32 3, %v308_v55 }
  0x7a   : > { %v641_v45 = vsel %vm634_vm5, %v637_v24, %v640_v9  ;;  %v740_v7 = vsel %vm738_vm9, %v739_v27, %v735_v41  ;;  %v926_v49 = vadd.s32 4294967169, %v339_v42  ;;  %v343_v35 = vor.u32 8388608, %v342_v2 }
  0x7b   : > { %v1379_v28 = vsel %vm632_vm8, nan, %v641_v45  ;;  %v312_v37 = vmul.f32 %v311_v31, %v309_v5  ;;  %v319_v38 = vmul.f32 %v318_v15, %v309_v5  ;;  %v741_v19 = vadd.s32 %v740_v7, %v736_v21 }
  0x7c   : > { %810 = vrot.lane.b32.xlu1 %v1379_v28, %s1016_s17  ;;  %v345_v62 = vadd.s32 1, %v926_v49  ;;  %vm330_vm11 = vcmp.eq.s32.totalorder %v325_v60, 2  ;;  %vm326_vm13 = vcmp.lt.s32.totalorder %v325_v60, 2  ;;  %vm327_vm14 = vcmp.eq.s32.totalorder %v325_v60, 0 }
  0x7d   : > { %v313_v46 = vadd.f32 -0.4999988, %v312_v37  ;;  %v320_v57 = vadd.f32 -0.16666654, %v319_v38  ;;  %v742_v51 = vadd.s32 536870912, %v741_v19  ;;  %vm645_vm5 = vcmp.lt.s32.totalorder %v1071_v18, 0 }
  0x7e   : > { %vm346_vm10 = vcmp.gt.s32.totalorder %v345_v62, 0  ;;  %vm1441_vm6 = vcmp.le.f32.partialorder %v643_v13, 0.7853982 }
  0x7f   : > { %v314_v25 = vmul.f32 %v313_v46, %v309_v5  ;;  %v321_v32 = vmul.f32 %v320_v57, %v309_v5  ;;  %v1386_v47 = vshrl.u32 %v742_v51, 30  ;;  %v347_v59 = vsel %vm346_vm10, %v345_v62, 0 }
  0x80   : > { %v349_v63 = vand.u32 31, %v347_v59  ;;  %v1392_v1 = vshrl.u32 %v347_v59, 5 }
  0x81   : > { %v315_v23 = vadd.f32 1.0, %v314_v25  ;;  %v322_v12 = vadd.f32 1.0, %v321_v32  ;;  %v744_v33 = vshll.u32 %v1386_v47, 30 }
  0x82   : > { %v350_v53 = vsub.s32 32, %v349_v63  ;;  %v352_v43 = vshll.u32 %v1009_v48, %v349_v63  ;;  %v355_v3 = vshll.u32 %v1010_v50, %v349_v63  ;;  %v358_v40 = vshll.u32 %v1011_v52, %v349_v63 }
  0x83   : > { %v323_v26 = vmul.f32 %v322_v12, %v307_v10  ;;  %v331_v30 = vxor.u32 2147483648, %v315_v23  ;;  %v745_v6 = vsub.s32 %v741_v19, %v744_v33  ;;  %v361_v14 = vshll.u32 %v1012_v54, %v349_v63 }
  0x84   : > { %v353_v41 = vshrl.u32 %v1010_v50, %v350_v53  ;;  %v364_v21 = vshll.u32 %v1013_v56, %v349_v63  ;;  %v356_v58 = vshrl.u32 %v1011_v52, %v350_v53  ;;  %v359_v34 = vshrl.u32 %v1012_v54, %v350_v53 }
  0x85   : > { %v328_v8 = vxor.u32 2147483648, %v323_v26  ;;  %v332_v61 = vsel %vm330_vm11, %v331_v30, %v323_v26  ;;  %vm746_vm15 = vcmp.lt.s32.totalorder %v745_v6, 0  ;;  %v747_v29 = vsub.s32 0, %v745_v6 }
  0x86   : > { %v362_v45 = vshrl.u32 %v1013_v56, %v350_v53  ;;  %v365_v27 = vshrl.u32 %v1014_v4, %v350_v53  ;;  %v737_v50 = vadd.s32 %v1350_v44, %v1356_v36  ;;  %v354_v17 = vor.u32 %v353_v41, %v352_v43 }
  0x87   : > { %v329_v22 = vsel %vm327_vm14, %v315_v23, %v328_v8  ;;  %v748_v10 = vsel %vm746_vm15, %v747_v29, %v745_v6  ;;  %v357_v31 = vor.u32 %v356_v58, %v355_v3  ;;  %vm367_vm1 = vcmp.lt.s32.totalorder %v1392_v1, 1 }
  0x88   : > { %v333_v9 = vsel %vm326_vm13, %v329_v22, %v332_v61  ;;  %v749_v5 = vclz %v748_v10  ;;  %v363_v16 = vor.u32 %v362_v45, %v361_v14  ;;  %v1414_v52 = vshll.u32 %v343_v35, 8 }
  0x89   : > { %v1403_v24 = vsel %vm324_vm12, nan, %v333_v9  ;;  %v360_v15 = vor.u32 %v359_v34, %v358_v40  ;;  %v366_v56 = vor.u32 %v365_v27, %v364_v21  ;;  %vm370_vm2 = vcmp.lt.s32.totalorder %v1392_v1, 4 }
  0x8a   : > { %806 = vrot.lane.b32.xlu0 %v1403_v24, %s1016_s17  ;;  %v933_v11 = vadd.s32 4294967294, %v749_v5  ;;  %vm369_vm3 = vcmp.lt.s32.totalorder %v1392_v1, 3  ;;  %vm368_vm4 = vcmp.lt.s32.totalorder %v1392_v1, 2  ;;  %v375_v4 = vsel %vm367_vm1, %v354_v17, %v357_v31 }
  0x8b   : > { %v376_v37 = vsel %vm370_vm2, %v363_v16, 920167782  ;;  %v384_v38 = vand.u32 65535, %v1414_v52  ;;  %v379_v49 = vsel %vm367_vm1, %v357_v31, %v360_v15  ;;  %v380_v46 = vsel %vm370_vm2, %v366_v56, 1326507024 }
  0x8c   : > { %vm934_vm0 = vcmp.lt.s32.totalorder %v933_v11, 0  ;;  %v377_v19 = vsel %vm369_vm3, %v360_v15, %v376_v37  ;;  %v385_v57 = vshrl.u32 %v1414_v52, 16  ;;  %v381_v25 = vsel %vm369_vm3, %v363_v16, %v380_v46 }
  0x8d   : > { %v752_v54 = vsel %vm934_vm0, 0, %v933_v11  ;;  %v378_v62 = vsel %vm368_vm4, %v375_v4, %v377_v19  ;;  %v351_v32 = vshrl.u32 %v1009_v48, %v350_v53  ;;  %v382_v2 = vsel %vm368_vm4, %v379_v49, %v381_v25 }
  0x8e   : > { %v753_v7 = vsub.s32 32, %v752_v54  ;;  %v754_v42 = vshll.u32 %v745_v6, %v752_v54  ;;  %v757_v55 = vsub.s32 4294967266, %v752_v54  ;;  %v408_v23 = vand.u32 65535, %v378_v62 }
  0x8f   : > { %v386_v59 = vand.u32 65535, %v382_v2  ;;  %v387_v26 = vshrl.u32 %v382_v2, 16  ;;  %v372_v6 = vsel %vm370_vm2, %v360_v15, 2102212464  ;;  %v409_v35 = vshrl.u32 %v378_v62, 16 }
  0x90   : > { %v755_v44 = vshrl.u32 %v737_v50, %v753_v7  ;;  %v758_v36 = vadd.s32 127, %v757_v55  ;;  %v412_v63 = vmul.u32 %v408_v23, %v385_v57  ;;  %v767_v53 = vsub.s32 4, %v1386_v47 }
  0x91   : > { %v388_v8 = vmul.u32 %v386_v59, %v384_v38  ;;  %v389_v61 = vmul.u32 %v387_v26, %v384_v38  ;;  %v390_v29 = vmul.u32 %v386_v59, %v385_v57  ;;  %v371_v43 = vsel %vm367_vm1, %v351_v32, %v354_v17 }
  0x92   : > { %v756_v51 = vor.u32 %v755_v44, %v754_v42  ;;  %v759_v60 = vshll.u32 %v758_v36, 23  ;;  %v410_v3 = vmul.u32 %v408_v23, %v384_v38  ;;  %v411_v22 = vmul.u32 %v409_v35, %v384_v38 }
  0x93   : > { %v391_v10 = vmul.u32 %v387_v26, %v385_v57  ;;  %v392_v40 = vshll.u32 %v389_v61, 16  ;;  %v394_v14 = vshll.u32 %v390_v29, 16  ;;  %v373_v9 = vsel %vm369_vm3, %v357_v31, %v372_v6 }
  0x94   : > { %v760_v12 = vor.u32 4788187, %v759_v60  ;;  %v763_v33 = vcvt.s32.f32 %v756_v51  ;;  %v413_v5 = vmul.u32 %v409_v35, %v385_v57  ;;  %v414_v41 = vshll.u32 %v411_v22, 16 }
  0x95   : > { %v416_v21 = vshll.u32 %v412_v63, 16  ;;  %v393_v34 = vshrl.u32 %v389_v61, 16  ;;  %vm396_vm7 = vc.u32 %v388_v8, %v392_v40  ;;  %v398_v45 = vadd.s32 %v392_v40, %v388_v8 }
  0x96   : > { %v761_v48 = vand.u32 2147483647, %v760_v12  ;;  %v397_v11 = vsel %vm396_vm7, 1, %v1015_v20  ;;  %v415_v27 = vshrl.u32 %v411_v22, 16  ;;  %vm418_vm8 = vc.u32 %v410_v3, %v414_v41 }
  0x97   : > { %v420_v50 = vadd.s32 %v414_v41, %v410_v3  ;;  %v399_v16 = vadd.s32 %v397_v11, %v391_v10  ;;  %vm400_vm9 = vc.u32 %v398_v45, %v394_v14  ;;  %v419_v54 = vsel %vm418_vm8, 1, %v1015_v20 }
  0x98   : > { %v764_v13 = vmul.f32 %v763_v33, %v761_v48  ;;  %v401_v15 = vsel %vm400_vm9, 1, %v1015_v20  ;;  %v421_v56 = vadd.s32 %v419_v54, %v413_v5  ;;  %v395_v42 = vshrl.u32 %v390_v29, 16 }
  0x99   : > { %vm422_vm10 = vc.u32 %v420_v50, %v416_v21  ;;  %v403_v55 = vadd.s32 %v401_v15, %v399_v16  ;;  %v768_v44 = vsel %vm645_vm5, %v767_v53, %v1386_v47  ;;  %v417_v36 = vshrl.u32 %v412_v63, 16 }
  0x9a   : > { %v765_v58 = vxor.u32 2147483648, %v764_v13  ;;  %v423_v4 = vsel %vm422_vm10, 1, %v1015_v20  ;;  %v424_v46 = vadd.s32 %v420_v50, %v416_v21  ;;  %v374_v57 = vsel %vm368_vm4, %v371_v43, %v373_v9 }
  0x9b   : > { %v425_v37 = vadd.s32 %v423_v4, %v421_v56  ;;  %v404_v49 = vadd.s32 %v403_v55, %v393_v34  ;;  %v770_v20 = vsel %vm1441_vm6, 0, %v768_v44  ;;  %v428_v47 = vmul.u32 %v1414_v52, %v374_v57 }
  0x9c   : > { %v766_v17 = vsel %vm645_vm5, %v765_v58, %v764_v13  ;;  %v787_v26 = vand.u32 3, %v770_v20  ;;  %vm786_vm15 = vweird.f32 %v1071_v18  ;;  %vm337_vm2 = vcmp.lt.s32.totalorder %v1366_v39, 0 }
  0x9d   : > { %v769_v31 = vsel %vm1441_vm6, %v1071_v18, %v766_v17  ;;  %v426_v51 = vadd.s32 %v425_v37, %v415_v27  ;;  %v405_v25 = vadd.s32 %v404_v49, %v395_v42  ;;  %vm1477_vm3 = vcmp.le.f32.partialorder %v335_v0, 0.7853982 }
  0x9e   : > { %v771_v7 = vmul.f32 %v769_v31, %v769_v31  ;;  %vm792_vm12 = vcmp.eq.s32.totalorder %v787_v26, 2  ;;  %vm789_vm13 = vcmp.eq.s32.totalorder %v787_v26, 0  ;;  %vm788_vm14 = vcmp.lt.s32.totalorder %v787_v26, 2 }
  0x9f   : > { %v427_v32 = vadd.s32 %v426_v51, %v417_v36  ;;  %vm430_vm11 = vc.u32 %v405_v25, %v424_v46  ;;  %v429_v21 = vadd.s32 %v424_v46, %v405_v25  ;;  %vm478_vm7 = vweird.f32 %v1366_v39 }
  0xa0   : > { %v772_v38 = vmul.f32 -0.001358992, %v771_v7  ;;  %v779_v19 = vmul.f32 -0.00019511016, %v771_v7  ;;  %vm797_vm8 = vcmask 523264  }
  0xa1   : > { %v431_v12 = vadd.s32 1, %v427_v32  ;;  %798 = vst.msk [vmem:[%s146_s22] sm:$0xff] %vm797_vm8, %v1403_v24 }
  0xa2   : > { %v773_v60 = vadd.f32 0.041655596, %v772_v38  ;;  %v780_v62 = vadd.f32 0.008332121, %v779_v19  ;;  %800 = vst.msk [vmem:[%s146_s22 + $0x10] sm:$0xff] %vm797_vm8, %v1379_v28 }
  0xa3   : > { %v432_v6 = vsel %vm430_vm11, %v431_v12, %v427_v32 }
  0xa4   : > { %v774_v2 = vmul.f32 %v773_v60, %v771_v7  ;;  %v781_v23 = vmul.f32 %v780_v62, %v771_v7  ;;  %v433_v63 = vadd.s32 %v432_v6, %v428_v47 }
  0xa6   : > { %v775_v33 = vadd.f32 -0.4999988, %v774_v2  ;;  %v782_v59 = vadd.f32 -0.16666654, %v781_v23  ;;  %v434_v61 = vadd.s32 536870912, %v433_v63 }
  0xa8   : > { %v776_v1 = vmul.f32 %v775_v33, %v771_v7  ;;  %v783_v35 = vmul.f32 %v782_v59, %v771_v7  ;;  %v435_v53 = vshrl.u32 %v434_v61, 30 }
  0xaa   : > { %v777_v48 = vadd.f32 1.0, %v776_v1  ;;  %v784_v8 = vadd.f32 1.0, %v783_v35  ;;  %v436_v3 = vshll.u32 %v435_v53, 30  ;;  %v459_v55 = vsub.s32 4, %v435_v53 }
  0xac   : > { %v785_v30 = vmul.f32 %v784_v8, %v769_v31  ;;  %v793_v29 = vxor.u32 2147483648, %v777_v48  ;;  %v437_v13 = vsub.s32 %v433_v63, %v436_v3  ;;  %v460_v38 = vsel %vm337_vm2, %v459_v55, %v435_v53 }
  0xad   : > { %v462_v46 = vsel %vm1477_vm3, 0, %v460_v38 }
  0xae   : > { %v790_v43 = vxor.u32 2147483648, %v785_v30  ;;  %v794_v52 = vsel %vm792_vm12, %v793_v29, %v785_v30  ;;  %vm438_vm0 = vcmp.lt.s32.totalorder %v437_v13, 0  ;;  %v439_v14 = vsub.s32 0, %v437_v13 }
  0xaf   : > { %v479_v62 = vand.u32 3, %v462_v46 }
  0xb0   : > { %v791_v22 = vsel %vm789_vm13, %v777_v48, %v790_v43  ;;  %v440_v9 = vsel %vm438_vm0, %v439_v14, %v437_v13 }
  0xb1   : > { %v795_v10 = vsel %vm788_vm14, %v791_v22, %v794_v52  ;;  %v441_v5 = vclz %v440_v9  ;;  %vm484_vm4 = vcmp.eq.s32.totalorder %v479_v62, 2  ;;  %vm481_vm5 = vcmp.eq.s32.totalorder %v479_v62, 0 }
  0xb2   : > { %v1470_v40 = vsel %vm786_vm15, nan, %v795_v10  ;;  %vm480_vm6 = vcmp.lt.s32.totalorder %v479_v62, 2 }
  0xb3   : > { %812 = vrot.lane.b32.xlu1 %v1470_v40, %s1016_s17  ;;  %v927_v41 = vadd.s32 4294967294, %v441_v5  ;;  %801 = vst.msk [vmem:[%s146_s22 + $0x18] sm:$0xff] %vm797_vm8, %v1470_v40 }
  0xb5   : > { %vm928_vm1 = vcmp.lt.s32.totalorder %v927_v41, 0 }
  0xb6   : > { %v444_v58 = vsel %vm928_vm1, 0, %v927_v41 }
  0xb7   : > { %v445_v34 = vsub.s32 32, %v444_v58  ;;  %v446_v45 = vshll.u32 %v437_v13, %v444_v58  ;;  %v449_v11 = vsub.s32 4294967266, %v444_v58 }
  0xb9   : > { %v447_v18 = vshrl.u32 %v429_v21, %v445_v34  ;;  %v450_v27 = vadd.s32 127, %v449_v11 }
  0xbb   : > { %v448_v50 = vor.u32 %v447_v18, %v446_v45  ;;  %v451_v17 = vshll.u32 %v450_v27, 23 }
  0xbd   : > { %v452_v16 = vor.u32 4788187, %v451_v17  ;;  %v455_v54 = vcvt.s32.f32 %v448_v50 }
  0xbf   : > { %v453_v31 = vand.u32 2147483647, %v452_v16 }
  0xc1   : > { %v456_v15 = vmul.f32 %v455_v54, %v453_v31 }
  0xc3   : > { %v457_v7 = vxor.u32 2147483648, %v456_v15 }
  0xc5   : > { %v458_v42 = vsel %vm337_vm2, %v457_v7, %v456_v15 }
  0xc6   : > { %v461_v4 = vsel %vm1477_vm3, %v1366_v39, %v458_v42 }
  0xc7   : > { %v463_v44 = vmul.f32 %v461_v4, %v461_v4 }
  0xc9   : > { %v464_v36 = vmul.f32 -0.001358992, %v463_v44  ;;  %v471_v37 = vmul.f32 -0.00019511016, %v463_v44 }
  0xcb   : > { %v465_v19 = vadd.f32 0.041655596, %v464_v36  ;;  %v472_v49 = vadd.f32 0.008332121, %v471_v37 }
  0xcd   : > { %v466_v0 = vmul.f32 %v465_v19, %v463_v44  ;;  %v473_v57 = vmul.f32 %v472_v49, %v463_v44 }
  0xcf   : > { %v467_v51 = vadd.f32 -0.4999988, %v466_v0  ;;  %v474_v60 = vadd.f32 -0.16666654, %v473_v57 }
  0xd1   : > { %v468_v25 = vmul.f32 %v467_v51, %v463_v44  ;;  %v475_v20 = vmul.f32 %v474_v60, %v463_v44 }
  0xd3   : > { %v469_v32 = vadd.f32 1.0, %v468_v25  ;;  %v476_v2 = vadd.f32 1.0, %v475_v20 }
  0xd5   : > { %v477_v23 = vmul.f32 %v476_v2, %v461_v4  ;;  %v485_v47 = vxor.u32 2147483648, %v469_v32 }
  0xd7   : > { %v482_v12 = vxor.u32 2147483648, %v477_v23  ;;  %v486_v33 = vsel %vm484_vm4, %v485_v47, %v477_v23 }
  0xd9   : > { %v483_v59 = vsel %vm481_vm5, %v469_v32, %v482_v12 }
  0xda   : > { %v487_v26 = vsel %vm480_vm6, %v483_v59, %v486_v33 }
  0xdb   : > { %v488_v6 = vsel %vm478_vm7, nan, %v487_v26 }
  0xdc   : > { %808 = vrot.lane.b32.xlu0 %v488_v6, %s1016_s17  ;;  %799 = vst.msk [vmem:[%s146_s22 + $0x8] sm:$0xff] %vm797_vm8, %v488_v6 }
  0xee   : > { %v811_v1 = vpop.permute.xlu1 %810 }
  0xef   : > { %820 = vst.msk [vmem:[%s152_s25 + $0x10] sm:$0xff] %vm797_vm8, %v811_v1 }
  0xfc   : > { %v807_v35 = vpop.permute.xlu0 %806 }
  0xfd   : > { %818 = vst.msk [vmem:[%s152_s25] sm:$0xff] %vm797_vm8, %v807_v35 }
 0x125   : > { %v813_v39 = vpop.permute.xlu1 %812 }
 0x126   : > { %821 = vst.msk [vmem:[%s152_s25 + $0x18] sm:$0xff] %vm797_vm8, %v813_v39 }
 0x14e   : > { %v809_v63 = vpop.permute.xlu0 %808 }
 0x14f   : > { %819 = vst.msk [vmem:[%s152_s25 + $0x8] sm:$0xff] %vm797_vm8, %v809_v63 }
 0x150 PF: > { %s14_s9 = sadd.s32 1, %s1006_s9  }
 0x151   : > { %p11_p7 = scmp.ge.s32.totalorder %s14_s9, 6  }
 0x153   :  { %13 = sbr.rel (!%p11_p7) target bundleno = 1 (0x1), region = 68 }
 0x158   :  { %861 = vsyncpa [#allocation3], 1 }
 0x159   :  { %863 = vsyncpa [#allocation3 + $0x1], 1 }

</bundles_post_ra>
